<compile_context>
chip_gen: v6e
topology: v6e:2x2x1
jax: 0.10.0
libtpu: 0.0.40
codegen_flags: <defaults>
</compile_context>

<pallas_src>
import math

import numpy as np
import jax
import jax.numpy as jnp
from jax.experimental import pallas as pl
from jax.experimental.pallas import tpu as pltpu

LANE = 128          # vreg lane width (last dim)
F32_SUBLANE = 8     # f32 sublane tile
BF16_SUBLANE = 16   # bf16 sublane tile


def _round_up(v, m):
    return ((v + m - 1) // m) * m


def _apply_activation(h, name):
    if name == "relu":
        return jnp.maximum(h, 0.0)
    elif name == "leaky_relu":
        return jnp.where(h >= 0.0, h, 0.01 * h)   # PyTorch default slope 0.01
    elif name == "sigmoid":
        return jax.nn.sigmoid(h)
    else:
        raise ValueError(f"unsupported activation {name}")


# ----------------------------------------------------------------------------
# Fused Pallas kernel: all conv layers + head + sigmoid + graph pooling
# ----------------------------------------------------------------------------
def _make_fused_kernel(num_conv, activation):
    """Refs: x (N_pad,H_pad) bf16, A (N_pad,N_pad) bf16, Wc (L,H_pad,H_pad) bf16,
       bc (L,1,H_pad) f32, W_fc (H_pad,C_pad) bf16, b_fc (1,C_pad) f32,
       pool (G_pad,N_pad) f32, out (G_pad,C_pad) f32."""

    def kernel(x_ref, a_ref, wc_ref, bc_ref, wfc_ref, bfc_ref, pool_ref, out_ref):
        # A is read once (already bf16) and reused by every layer from VMEM.
        a = a_ref[...]
        h = x_ref[...]

        # Layers are unrolled statically; each bias broadcast is emitted once.
        for l in range(num_conv):
            w = wc_ref[l]                 # (H_pad, H_pad) bf16, static index
            b = bc_ref[l]                 # (1, H_pad) f32
            z = jnp.dot(h, w, preferred_element_type=jnp.float32) + b
            z = jnp.dot(a, z.astype(jnp.bfloat16),
                        preferred_element_type=jnp.float32)
            h = _apply_activation(z, activation).astype(jnp.bfloat16)
            # dropout == identity at inference

        # FC head + sigmoid
        z = jnp.dot(h, wfc_ref[...], preferred_element_type=jnp.float32) + bfc_ref[...]
        z = jnp.dot(a, z.astype(jnp.bfloat16),
                    preferred_element_type=jnp.float32)
        s = jax.nn.sigmoid(z)                                    # (N_pad, C_pad) f32

        # Per-graph mean over nodes via pooling matmul (pool[g, n] = 1/size_g).
        # Output is lane-dense (G_pad, C_pad); mean over real classes is done
        # in the wrapper so the store path stays unmasked.
        out_ref[...] = jnp.dot(pool_ref[...], s,
                               preferred_element_type=jnp.float32
                               ).astype(out_ref.dtype)

    return kernel


# ----------------------------------------------------------------------------
# One-time preparation: pad + cast params / inputs, build pooling matrix
# ----------------------------------------------------------------------------
def prepare_params(conv_params, fc_params, input_features):
    """Pad to lane tiles, cast weights to bf16, stack per-layer arrays. Done ONCE."""
    dims = [input_features] + [w.shape[1] for (w, _) in conv_params]
    h_pad = _round_up(max(dims), LANE)
    assert max(dims) <= h_pad

    wc, bc = [], []
    for (w, b) in conv_params:
        in_d, out_d = w.shape
        wc.append(jnp.pad(w, ((0, h_pad - in_d), (0, h_pad - out_d))
                          ).astype(jnp.bfloat16))
        bc.append(jnp.pad(b, ((0, 0), (0, h_pad - out_d))))
    wc = jnp.stack(wc)                    # (L, H_pad, H_pad) bf16
    bc = jnp.stack(bc)                    # (L, 1, H_pad)      f32

    w_fc, b_fc = fc_params
    fc_in, c = w_fc.shape
    c_pad = _round_up(c, LANE)
    w_fc_p = jnp.pad(w_fc, ((0, h_pad - fc_in), (0, c_pad - c))).astype(jnp.bfloat16)
    b_fc_p = jnp.pad(b_fc, ((0, 0), (0, c_pad - c)))

    return dict(wc=wc, bc=bc, w_fc=w_fc_p, b_fc=b_fc_p,
                h_pad=h_pad, c_pad=c_pad, num_classes=c,
                num_conv=len(conv_params))


def prepare_inputs(x, a, graph_sizes, h_pad):
    """Pad node dim only to the bf16 sublane tile, cast x/A to bf16, build pool."""
    n, f = x.shape
    assert sum(graph_sizes) == n, "graphs must be contiguous and cover all nodes"
    n_pad = _round_up(n, BF16_SUBLANE)
    g = len(graph_sizes)
    g_pad = _round_up(g, F32_SUBLANE)

    x_p = jnp.pad(x, ((0, n_pad - n), (0, h_pad - f))).astype(jnp.bfloat16)
    a_p = jnp.pad(a, ((0, n_pad - n), (0, n_pad - n))).astype(jnp.bfloat16)

    # Pool matrix built host-side with numpy (no per-call XLA scatter ops).
    pool_np = np.zeros((g_pad, n_pad), np.float32)
    off = 0
    for gi, sz in enumerate(graph_sizes):
        pool_np[gi, off:off + sz] = 1.0 / sz
        off += sz
    pool = jnp.asarray(pool_np)

    return x_p, a_p, pool, n_pad, g_pad


# ----------------------------------------------------------------------------
# Forward: single fused pallas_call + tiny wrapper finalize
# ----------------------------------------------------------------------------
def as_gcn_forward(x_p, a_p, pool, params, activation, num_graphs):
    n_pad = x_p.shape[0]
    g_pad = pool.shape[0]
    h_pad, c_pad = params["h_pad"], params["c_pad"]
    num_conv = params["num_conv"]
    inputs = [x_p, a_p, params["wc"], params["bc"],
              params["w_fc"], params["b_fc"], pool]

    # Advisory cost estimate, kept in sync with bf16 operands / reduced padding.
    flops = 0
    transcendentals = 0
    for _ in range(num_conv):
        flops += 2 * n_pad * h_pad * h_pad            # X @ W
        flops += 2 * n_pad * n_pad * h_pad            # A @ z
        if activation == "sigmoid":
            transcendentals += n_pad * h_pad
    flops += 2 * n_pad * h_pad * c_pad                # head X @ W_fc
    flops += 2 * n_pad * n_pad * c_pad                # head A @ z
    flops += 2 * g_pad * n_pad * c_pad                # pooling
    transcendentals += n_pad * c_pad                  # final sigmoid
    bytes_accessed = sum(int(t.size) * t.dtype.itemsize for t in inputs)
    bytes_accessed += g_pad * c_pad * 4               # output
    cost = pl.CostEstimate(flops=int(flops),
                           transcendentals=int(transcendentals),
                           bytes_accessed=int(bytes_accessed))

    vmem_spec = pl.BlockSpec(memory_space=pltpu.MemorySpace.VMEM)
    kernel = _make_fused_kernel(num_conv, activation)

    pooled = pl.pallas_call(
        kernel,
        out_shape=jax.ShapeDtypeStruct((g_pad, c_pad), jnp.float32),
        in_specs=[vmem_spec] * len(inputs),
        out_specs=vmem_spec,
        compiler_params=pltpu.CompilerParams(vmem_limit_bytes=32 * 1024 * 1024),
        cost_estimate=cost,
    )(*inputs)

    # Mean over the *real* classes (padded class columns hold sigmoid(0)=0.5
    # and are sliced away here, outside the kernel).
    c = params["num_classes"]
    return jnp.mean(pooled[:num_graphs, :c], axis=1)


# ----------------------------------------------------------------------------
# Parameter setup (xavier_uniform weights as in init_weights, Linear-style bias)
# ----------------------------------------------------------------------------
def _xavier_uniform(key, in_d, out_d):
    limit = math.sqrt(6.0 / (in_d + out_d))
    # stored pre-transposed: (in_d, out_d), kernel computes X @ W
    return jax.random.uniform(key, (in_d, out_d), jnp.float32, -limit, limit)


def make_params(key, input_features, hidden_channels, out_classes):
    params = []
    in_d = input_features
    for d in hidden_channels:
        key, kw, kb = jax.random.split(key, 3)
        w = _xavier_uniform(kw, in_d, d)
        bound = 1.0 / math.sqrt(in_d)
        b = jax.random.uniform(kb, (1, d), jnp.float32, -bound, bound)
        params.append((w, b))
        in_d = d
    key, kw, kb = jax.random.split(key, 3)
    w_fc = _xavier_uniform(kw, in_d, out_classes)
    bound = 1.0 / math.sqrt(in_d)
    b_fc = jax.random.uniform(kb, (1, out_classes), jnp.float32, -bound, bound)
    return params, (w_fc, b_fc)


# ----------------------------------------------------------------------------
# Pure-JAX (f32) reference implementing the full module semantics
# ----------------------------------------------------------------------------
def as_gcn_reference(x, a, graph_sizes, conv_params, fc_params, activation):
    for (w, b) in conv_params:
        h = a @ (x @ w + b)
        x = _apply_activation(h, activation)     # relu / leaky_relu / sigmoid
    w_fc, b_fc = fc_params
    out = jax.nn.sigmoid(a @ (x @ w_fc + b_fc))
    means = []
    off = 0
    for sz in graph_sizes:
        means.append(jnp.mean(out[off:off + sz]))
        off += sz
    return jnp.stack(means)


if __name__ == "__main__":
    # 16 nodes, 8 input features, hidden_channels=[32, 32], 4 classes,
    # 2 graphs of 8 nodes each.
    N = 16
    INPUT_FEATURES = 8
    HIDDEN = [32, 32]
    OUT_CLASSES = 4
    GRAPH_SIZES = (8, 8)

    key = jax.random.PRNGKey(0)
    key, kx, ka, kp = jax.random.split(key, 4)

    x = jax.random.normal(kx, (N, INPUT_FEATURES), jnp.float32)
    # symmetric 0/1 adjacency with self loops (typical GCN input)
    a_rand = jax.random.uniform(ka, (N, N), jnp.float32)
    a = ((a_rand + a_rand.T) > 1.2).astype(jnp.float32) + jnp.eye(N, dtype=jnp.float32)

    conv_params, fc_params = make_params(kp, INPUT_FEATURES, HIDDEN, OUT_CLASSES)

    # Cover all three supported activations against the f32 reference.
    # Tolerance accounts for bf16 matmul operands (f32 accumulation) in the kernel.
    for activation in ("relu", "leaky_relu", "sigmoid"):
        params = prepare_params(conv_params, fc_params, INPUT_FEATURES)   # once
        x_p, a_p, pool, _, _ = prepare_inputs(x, a, GRAPH_SIZES, params["h_pad"])
        out = as_gcn_forward(x_p, a_p, pool, params, activation, len(GRAPH_SIZES))
        out = jax.block_until_ready(out)
        ref = as_gcn_reference(x, a, GRAPH_SIZES, conv_params, fc_params, activation)
        assert out.shape == (len(GRAPH_SIZES),), (activation, out.shape)
        assert jnp.allclose(out, ref, atol=2e-2, rtol=2e-2), (activation, out, ref)

    print("KERNEL_OK")
</pallas_src>

<mosaic_0001>
module attributes {stable_mosaic.version = 11 : i64} {
  func.func @kernel(%arg0: memref<16x128xbf16, #tpu.memory_space<vmem>>, %arg1: memref<16x16xbf16, #tpu.memory_space<vmem>>, %arg2: memref<2x128x128xbf16, #tpu.memory_space<vmem>>, %arg3: memref<2x1x128xf32, #tpu.memory_space<vmem>>, %arg4: memref<128x128xbf16, #tpu.memory_space<vmem>>, %arg5: memref<1x128xf32, #tpu.memory_space<vmem>>, %arg6: memref<8x16xf32, #tpu.memory_space<vmem>>, %arg7: memref<8x128xf32, #tpu.memory_space<vmem>>) attributes {dimension_semantics = [], scalar_prefetch = 0 : i64, scratch_operands = 0 : i64, tpu.core_type = #tpu.core_type<tc>} {
    %c0 = arith.constant 0 : index
    %c0_0 = arith.constant 0 : index
    %0 = vector.load %arg1[%c0, %c0_0] : memref<16x16xbf16, #tpu.memory_space<vmem>>, vector<16x16xbf16>
    %c0_1 = arith.constant 0 : index
    %c0_2 = arith.constant 0 : index
    %1 = vector.load %arg0[%c0_1, %c0_2] : memref<16x128xbf16, #tpu.memory_space<vmem>>, vector<16x128xbf16>
    %c0_3 = arith.constant 0 : index
    %c0_4 = arith.constant 0 : index
    %c0_5 = arith.constant 0 : index
    %2 = vector.load %arg2[%c0_3, %c0_4, %c0_5] : memref<2x128x128xbf16, #tpu.memory_space<vmem>>, vector<1x128x128xbf16>
    %3 = vector.shape_cast %2 : vector<1x128x128xbf16> to vector<128x128xbf16>
    %c0_6 = arith.constant 0 : index
    %c0_7 = arith.constant 0 : index
    %c0_8 = arith.constant 0 : index
    %4 = vector.load %arg3[%c0_6, %c0_7, %c0_8] : memref<2x1x128xf32, #tpu.memory_space<vmem>>, vector<1x1x128xf32>
    %5 = vector.shape_cast %4 : vector<1x1x128xf32> to vector<1x128xf32>
    %cst = arith.constant dense<0.000000e+00> : vector<16x128xf32>
    %6 = tpu.matmul %1, %3, %cst {dimension_numbers = #tpu.dot_dimension_numbers<[1], [0], [0], [1], [0, 0, 1, 1], [], []>} : vector<16x128xbf16>, vector<128x128xbf16>, vector<16x128xf32> -> vector<16x128xf32>
    %7 = vector.broadcast %5 : vector<1x128xf32> to vector<16x128xf32>
    %8 = arith.addf %6, %7 : vector<16x128xf32>
    %9 = arith.truncf %8 : vector<16x128xf32> to vector<16x128xbf16>
    %cst_9 = arith.constant dense<0.000000e+00> : vector<16x128xf32>
    %10 = tpu.matmul %0, %9, %cst_9 {dimension_numbers = #tpu.dot_dimension_numbers<[1], [0], [0], [1], [0, 0, 1, 1], [], []>} : vector<16x16xbf16>, vector<16x128xbf16>, vector<16x128xf32> -> vector<16x128xf32>
    %cst_10 = arith.constant 0.000000e+00 : f32
    %11 = vector.broadcast %cst_10 : f32 to vector<16x128xf32>
    %12 = arith.maximumf %10, %11 : vector<16x128xf32>
    %13 = arith.truncf %12 : vector<16x128xf32> to vector<16x128xbf16>
    %c1 = arith.constant 1 : index
    %c0_11 = arith.constant 0 : index
    %c0_12 = arith.constant 0 : index
    %14 = vector.load %arg2[%c1, %c0_11, %c0_12] : memref<2x128x128xbf16, #tpu.memory_space<vmem>>, vector<1x128x128xbf16>
    %15 = vector.shape_cast %14 : vector<1x128x128xbf16> to vector<128x128xbf16>
    %c1_13 = arith.constant 1 : index
    %c0_14 = arith.constant 0 : index
    %c0_15 = arith.constant 0 : index
    %16 = vector.load %arg3[%c1_13, %c0_14, %c0_15] : memref<2x1x128xf32, #tpu.memory_space<vmem>>, vector<1x1x128xf32>
    %17 = vector.shape_cast %16 : vector<1x1x128xf32> to vector<1x128xf32>
    %cst_16 = arith.constant dense<0.000000e+00> : vector<16x128xf32>
    %18 = tpu.matmul %13, %15, %cst_16 {dimension_numbers = #tpu.dot_dimension_numbers<[1], [0], [0], [1], [0, 0, 1, 1], [], []>} : vector<16x128xbf16>, vector<128x128xbf16>, vector<16x128xf32> -> vector<16x128xf32>
    %19 = vector.broadcast %17 : vector<1x128xf32> to vector<16x128xf32>
    %20 = arith.addf %18, %19 : vector<16x128xf32>
    %21 = arith.truncf %20 : vector<16x128xf32> to vector<16x128xbf16>
    %cst_17 = arith.constant dense<0.000000e+00> : vector<16x128xf32>
    %22 = tpu.matmul %0, %21, %cst_17 {dimension_numbers = #tpu.dot_dimension_numbers<[1], [0], [0], [1], [0, 0, 1, 1], [], []>} : vector<16x16xbf16>, vector<16x128xbf16>, vector<16x128xf32> -> vector<16x128xf32>
    %cst_18 = arith.constant 0.000000e+00 : f32
    %23 = vector.broadcast %cst_18 : f32 to vector<16x128xf32>
    %24 = arith.maximumf %22, %23 : vector<16x128xf32>
    %25 = arith.truncf %24 : vector<16x128xf32> to vector<16x128xbf16>
    %c0_19 = arith.constant 0 : index
    %c0_20 = arith.constant 0 : index
    %26 = vector.load %arg4[%c0_19, %c0_20] : memref<128x128xbf16, #tpu.memory_space<vmem>>, vector<128x128xbf16>
    %cst_21 = arith.constant dense<0.000000e+00> : vector<16x128xf32>
    %27 = tpu.matmul %25, %26, %cst_21 {dimension_numbers = #tpu.dot_dimension_numbers<[1], [0], [0], [1], [0, 0, 1, 1], [], []>} : vector<16x128xbf16>, vector<128x128xbf16>, vector<16x128xf32> -> vector<16x128xf32>
    %c0_22 = arith.constant 0 : index
    %c0_23 = arith.constant 0 : index
    %28 = vector.load %arg5[%c0_22, %c0_23] : memref<1x128xf32, #tpu.memory_space<vmem>>, vector<1x128xf32>
    %29 = vector.broadcast %28 : vector<1x128xf32> to vector<16x128xf32>
    %30 = arith.addf %27, %29 : vector<16x128xf32>
    %31 = arith.truncf %30 : vector<16x128xf32> to vector<16x128xbf16>
    %cst_24 = arith.constant dense<0.000000e+00> : vector<16x128xf32>
    %32 = tpu.matmul %0, %31, %cst_24 {dimension_numbers = #tpu.dot_dimension_numbers<[1], [0], [0], [1], [0, 0, 1, 1], [], []>} : vector<16x16xbf16>, vector<16x128xbf16>, vector<16x128xf32> -> vector<16x128xf32>
    %33 = arith.negf %32 : vector<16x128xf32>
    %34 = math.exp %33 : vector<16x128xf32>
    %cst_25 = arith.constant 1.000000e+00 : f32
    %35 = vector.broadcast %cst_25 : f32 to vector<16x128xf32>
    %36 = arith.addf %35, %34 : vector<16x128xf32>
    %37 = arith.divf %35, %36 : vector<16x128xf32>
    %c0_26 = arith.constant 0 : index
    %c0_27 = arith.constant 0 : index
    %38 = vector.load %arg6[%c0_26, %c0_27] : memref<8x16xf32, #tpu.memory_space<vmem>>, vector<8x16xf32>
    %cst_28 = arith.constant dense<0.000000e+00> : vector<8x128xf32>
    %39 = tpu.matmul %38, %37, %cst_28 {dimension_numbers = #tpu.dot_dimension_numbers<[1], [0], [0], [1], [0, 0, 1, 1], [], []>} : vector<8x16xf32>, vector<16x128xf32>, vector<8x128xf32> -> vector<8x128xf32>
    %c0_29 = arith.constant 0 : index
    %c0_30 = arith.constant 0 : index
    %40 = vector.load %arg7[%c0_29, %c0_30] : memref<8x128xf32, #tpu.memory_space<vmem>>, vector<8x128xf32>
    tpu.vector_store %arg7[%c0_29, %c0_30], %39 {strides = array<i32>} : memref<8x128xf32, #tpu.memory_space<vmem>>, vector<8x128xf32>,
    return
  }
}

</mosaic_0001>

<bundles_post_ra>
// kernel: tpu_custom_call.1
= control target key start
LH: loop header
LB: loop body
LE: loop exit
PB: predicated region body
PF: predicated region fallthrough
CT: control target
= control target key end

     0   :  { %12 = vsyncpa [#allocation3], 0  ;;  %s1157_s0 = inlined_call_operand.hbm [shape: bf16[16,128], index: 0, kind: input, shape index: {}]   ;;  %s1158_s1 = inlined_call_operand.hbm [shape: bf16[16,16], index: 1, kind: input, shape index: {}]   ;;  %s1159_s2 = inlined_call_operand.hbm [shape: bf16[2,128,128], index: 2, kind: input, shape index: {}]   ;;  %s1160_s3 = inlined_call_operand.vmem [shape: f32[2,1,128], index: 3, kind: input, shape index: {}]   ;;  %s1161_s4 = inlined_call_operand.hbm [shape: bf16[128,128], index: 4, kind: input, shape index: {}]   ;;  %s1162_s5 = inlined_call_operand.hbm [shape: f32[1,128], index: 5, kind: input, shape index: {}]   ;;  %s1163_s6 = inlined_call_operand.vmem [shape: f32[8,16], index: 6, kind: input, shape index: {}]   ;;  %s1164_s7 = inlined_call_operand.hbm [shape: f32[8,128], index: 7, kind: output, shape index: {}]  }
   0x1   :  { %13 = vsyncpa [#allocation6], 0 }
   0x2   :  { %14 = vsyncpa [#allocation9], 0 }
   0x3   :  { %15 = vsyncpa [#allocation4], 0  ;;  %s1016_s24 = smov [#allocation5]   ;;  %s1017_s26 = smov [#allocation8]  }
   0x4   :  { %s33_s25 = sshll.u32 %s1016_s24, 4  ;;  %s59_s27 = sshll.u32 %s1017_s26, 4  ;;  %s34_s25 = int_to_ptr.vmem [resolvable:$true] %s33_s25  ;;  %s60_s27 = int_to_ptr.vmem [resolvable:$true] %s59_s27 }
   0x5   :  { %s896_s28 = scalar_lea.vmem %s34_s25, 128  ;;  %p901_p1 = scmp.lt.s32.totalorder %s34_s25, %s34_s25 }
   0x6   :  { %p897_p0 = scmp.ne.s32.totalorder %s34_s25, %s896_s28  ;;  %p902_p2 = scmp.lt.s32.totalorder %s896_s28, %s896_s28 }
   0x8   :  { %p903_p3 = por %p902_p2, %p901_p1 }
   0xa   :  { %p904_p4 = pnand %p903_p3, %p897_p0 }
   0xc   :  { %907 = shalt.err (!%p904_p4)
}
   0xd   :  { %s1018_s29 = smov 64   ;;  %s1019_s30 = smov 4  }
   0xe   :  { %39 = dma.hbm_to_vmem [thread:$0]  %s1158_s1, 128, %s34_s25, [#allocation6], %s1018_s29, %s1018_s29, %s1019_s30  }
   0xf   :  { %s916_s10 = scalar_lea.vmem %s60_s27, 1024  ;;  %p921_p6 = scmp.lt.s32.totalorder %s60_s27, %s60_s27 }
  0x10   :  { %p917_p5 = scmp.ne.s32.totalorder %s60_s27, %s916_s10  ;;  %p922_p7 = scmp.lt.s32.totalorder %s916_s10, %s916_s10 }
  0x12   :  { %p923_p8 = por %p922_p7, %p921_p6 }
  0x14   :  { %p924_p9 = pnand %p923_p8, %p917_p5 }
  0x16   :  { %927 = shalt.err (!%p924_p9)
}
  0x17   :  { %65 = dma.hbm_to_vmem [thread:$0]  %s1161_s4, 1024, %s60_s27, [#allocation9], %s1018_s29, %s1018_s29, %s1019_s30  }
  0x18   :  { %s1020_s13 = smov [#allocation2]   ;;  %s1021_s15 = smov [#allocation7]  }
  0x19   :  { %s21_s14 = sshll.u32 %s1020_s13, 4  ;;  %s45_s16 = sshll.u32 %s1021_s15, 4  ;;  %s22_s14 = int_to_ptr.vmem [resolvable:$true] %s21_s14  ;;  %s46_s16 = int_to_ptr.vmem [resolvable:$true] %s45_s16 }
  0x1a   :  { %s936_s1 = scalar_lea.vmem %s22_s14, 128  ;;  %p941_p11 = scmp.lt.s32.totalorder %s22_s14, %s22_s14 }
  0x1b   :  { %p937_p10 = scmp.ne.s32.totalorder %s22_s14, %s936_s1  ;;  %p942_p12 = scmp.lt.s32.totalorder %s936_s1, %s936_s1 }
  0x1d   :  { %p943_p13 = por %p942_p12, %p941_p11 }
  0x1f   :  { %p944_p0 = pnand %p943_p13, %p937_p10 }
  0x21   :  { %947 = shalt.err (!%p944_p0)
}
  0x22   :  { %27 = dma.hbm_to_vmem [thread:$0]  %s1157_s0, 128, %s22_s14, [#allocation3], %s1018_s29, %s1018_s29, %s1019_s30  }
  0x23   :  { %s956_s4 = scalar_lea.vmem %s46_s16, 2048  ;;  %p961_p2 = scmp.lt.s32.totalorder %s46_s16, %s46_s16 }
  0x24   :  { %p957_p1 = scmp.ne.s32.totalorder %s46_s16, %s956_s4  ;;  %p962_p3 = scmp.lt.s32.totalorder %s956_s4, %s956_s4 }
  0x26   :  { %p963_p4 = por %p962_p3, %p961_p2 }
  0x28   :  { %p964_p5 = pnand %p963_p4, %p957_p1 }
  0x2a   :  { %967 = shalt.err (!%p964_p5)
}
  0x2b   :  { %51 = dma.hbm_to_vmem [thread:$0]  %s1159_s2, 2048, %s46_s16, [#allocation6], %s1018_s29, %s1018_s29, %s1019_s30  }
  0x2c   :  { %s1022_s21 = smov [#allocation10]  }
  0x2d   :  { %s72_s22 = sshll.u32 %s1022_s21, 4  ;;  %s73_s22 = int_to_ptr.vmem [resolvable:$true] %s72_s22 }
  0x2e   :  { %s976_s23 = scalar_lea.vmem %s73_s22, 16  ;;  %s980_s0 = scalar_lea.vmem %s73_s22, 32 }
  0x2f   :  { %p977_p6 = scmp.ne.s32.totalorder %s73_s22, %s976_s23  ;;  %p981_p7 = scmp.lt.s32.totalorder %s73_s22, %s73_s22 }
  0x30   :  { %p982_p8 = scmp.lt.s32.totalorder %s980_s0, %s976_s23 }
  0x32   :  { %p983_p9 = por %p982_p8, %p981_p7 }
  0x34   :  { %p984_p10 = pnand %p983_p9, %p977_p6 }
  0x36   :  { %987 = shalt.err (!%p984_p10)
}
  0x37   :  { %75 = dma.hbm_to_vmem [thread:$0]  %s1162_s5, 16, %s73_s22, [#allocation9]  }
  0x38   :  { %1008 = dma.done.wait [#allocation3], 128  }
  0x39   :  { %1009 = vsyncadd [#allocation3], 4294967168 }
  0x3a   :  { %1010 = dma.done.wait [#allocation6], 2176  }
  0x3b   :  { %1011 = vsyncadd [#allocation6], 4294965120 }
  0x3c   :  { %1012 = dma.done.wait [#allocation9], 1040  }
  0x3d   :  { %1013 = vsyncadd [#allocation9], 4294966256  ;;  %v1023_v0 = vmov 0.0   ;;  %vm1024_vm0 = vmmov 0   ;;  %v854_v1 = vld [vmem:[#allocation7 + $0x38] sm:$0xff]   ;;  %v855_v2 = vld [vmem:[#allocation7 + $0x30] sm:$0xff]  }
  0x3e   :  { %759 = vmatprep.subr.bf16.mxu0 %v1023_v0  ;;  %775 = vmatprep.mubr.msk.bf16.mxu0 %vm1024_vm0, %v1023_v0  ;;  %v856_v3 = vld [vmem:[#allocation7 + $0x28] sm:$0xff]   ;;  %v857_v4 = vld [vmem:[#allocation7 + $0x20] sm:$0xff]   ;;  %v858_v5 = vld [vmem:[#allocation7 + $0x18] sm:$0xff]   ;;  %vm222_vm1 = vcmask 130048   ;;  %s1025_s29 = smov [#allocation11]  }
  0x3f   :  { %785 = vmatprep.subr.bf16.mxu1 %v1023_v0  ;;  %801 = vmatprep.mubr.msk.bf16.mxu1 %vm1024_vm0, %v1023_v0  ;;  %v859_v6 = vld [vmem:[#allocation7 + $0x10] sm:$0xff]   ;;  %v860_v7 = vld [vmem:[#allocation7 + $0x8] sm:$0xff]   ;;  %v861_v8 = vld [vmem:[#allocation7] sm:$0xff]   ;;  %s676_s30 = sshll.u32 %s1025_s29, 4  ;;  %s677_s30 = int_to_ptr.vmem [resolvable:$true] %s676_s30 }
  0x40   :  { %760 = vmatpush3.bf16.msra.mxu0 %v854_v1  ;;  %v862_v9 = vld [vmem:[#allocation2] sm:$0xff]   ;;  %v864_v10 = vld [vmem:[#allocation7 + $0x78] sm:$0xff]   ;;  %v866_v12 = vld [vmem:[#allocation7 + $0x68] sm:$0xff]   ;;  %s988_s8 = scalar_lea.vmem %s677_s30, 128  ;;  %p993_p12 = scmp.lt.s32.totalorder %s677_s30, %s677_s30 }
  0x41   :  { %761 = vmatprep.subr.bf16.mxu0 %v1023_v0  ;;  %786 = vmatpush3.bf16.msra.mxu1 %v864_v10  ;;  %v865_v11 = vld [vmem:[#allocation7 + $0x70] sm:$0xff]   ;;  %v867_v13 = vld [vmem:[#allocation7 + $0x60] sm:$0xff]   ;;  %v868_v14 = vld [vmem:[#allocation7 + $0x58] sm:$0xff]   ;;  %p989_p11 = scmp.ne.s32.totalorder %s677_s30, %s988_s8  ;;  %p994_p13 = scmp.lt.s32.totalorder %s988_s8, %s988_s8 }
  0x42   :  { %787 = vmatprep.subr.bf16.mxu1 %v1023_v0  ;;  %v869_v15 = vld [vmem:[#allocation7 + $0x50] sm:$0xff]   ;;  %v1118_v24 = vld [vmem:[#allocation5] sm:$0xff]   ;;  %v870_v25 = vld [vmem:[#allocation7 + $0x48] sm:$0xff]  }
  0x43   :  { %v687_v17 = vld [vmem:[%s1160_s3] ss:$0 sm:$0xff]  ;;  %v871_v26 = vld [vmem:[#allocation7 + $0x40] sm:$0xff]   ;;  %v872_v34 = vld [vmem:[#allocation8 + $0x38] sm:$0xff]   ;;  %p995_p0 = por %p994_p13, %p993_p12 }
  0x44   :  { %762 = vmatpush3.bf16.msra.mxu0 %v855_v2  ;;  %v873_v35 = vld [vmem:[#allocation8 + $0x30] sm:$0xff]   ;;  %v874_v36 = vld [vmem:[#allocation8 + $0x28] sm:$0xff]   ;;  %v875_v37 = vld [vmem:[#allocation8 + $0x20] sm:$0xff]  }
  0x45   :  { %763 = vmatprep.subr.bf16.mxu0 %v1023_v0  ;;  %788 = vmatpush3.bf16.msra.mxu1 %v865_v11  ;;  %v876_v38 = vld [vmem:[#allocation8 + $0x18] sm:$0xff]   ;;  %v877_v39 = vld [vmem:[#allocation8 + $0x10] sm:$0xff]   ;;  %v878_v48 = vld [vmem:[#allocation8 + $0x8] sm:$0xff]   ;;  %p996_p1 = pnand %p995_p0, %p989_p11 }
  0x46   :  { %789 = vmatprep.subr.bf16.mxu1 %v1023_v0  ;;  %v700_v41 = vld [vmem:[%s1160_s3 + $0x1] ss:$0 sm:$0xff]  ;;  %v879_v49 = vld [vmem:[#allocation8] sm:$0xff]  }
  0x47   :  { %v710_v58 = vld [vmem:[#allocation10] ss:$0 sm:$0xff] }
  0x48   :  { %764 = vmatpush3.bf16.msra.mxu0 %v856_v3 }
  0x49   :  { %765 = vmatprep.subr.bf16.mxu0 %v1023_v0  ;;  %790 = vmatpush3.bf16.msra.mxu1 %v866_v12 }
  0x4a   :  { %791 = vmatprep.subr.bf16.mxu1 %v1023_v0 }
  0x4c   :  { %766 = vmatpush3.bf16.msra.mxu0 %v857_v4 }
  0x4d   :  { %767 = vmatprep.subr.bf16.mxu0 %v1023_v0  ;;  %792 = vmatpush3.bf16.msra.mxu1 %v867_v13  ;;  %v595_v13 = vld [vmem:[%s1163_s6] sm:$0xff] }
  0x4e   :  { %793 = vmatprep.subr.bf16.mxu1 %v1023_v0 }
  0x50   :  { %768 = vmatpush3.bf16.msra.mxu0 %v858_v5 }
  0x51   :  { %769 = vmatprep.subr.bf16.mxu0 %v1023_v0  ;;  %794 = vmatpush3.bf16.msra.mxu1 %v868_v14 }
  0x52   :  { %795 = vmatprep.subr.bf16.mxu1 %v1023_v0 }
  0x54   :  { %770 = vmatpush3.bf16.msra.mxu0 %v859_v6 }
  0x55   :  { %771 = vmatprep.subr.bf16.mxu0 %v1023_v0  ;;  %796 = vmatpush3.bf16.msra.mxu1 %v869_v15 }
  0x56   :  { %797 = vmatprep.subr.bf16.mxu1 %v1023_v0 }
  0x58   :  { %772 = vmatpush3.bf16.msra.mxu0 %v860_v7 }
  0x59   :  { %773 = vmatprep.subr.bf16.mxu0 %v1023_v0  ;;  %798 = vmatpush3.bf16.msra.mxu1 %v870_v25 }
  0x5a   :  { %799 = vmatprep.subr.bf16.mxu1 %v1023_v0 }
  0x5c   :  { %774 = vmatpush3.bf16.msra.mxu0 %v861_v8 }
  0x5d   :  { %779 = vmatprep.subr.bf16.mxu0 %v1023_v0  ;;  %800 = vmatpush3.bf16.msra.mxu1 %v871_v26 }
  0x5e   :  { %811 = vmatprep.subr.bf16.mxu1 %v1023_v0 }
  0x5f   :  { %776 = vmatmul.mubr.bf16.vlgmr.msra.gmra.mxu0 %v862_v9 }
  0x60   :  { %781 = vmatprep.mubr.msk.bf16.mxu0 %vm1024_vm0, %v1023_v0 }
 0x11f   :  { %v209_v16 = vpop.f32.mrf.mxu0 }
 0x120   :  { %v210_v20 = vadd.f32 %v687_v17, %v209_v16 }
 0x121   :  { %v777_v18 = vpop.f32.mrf.mxu0 }
 0x123   :  { %v212_v19 = vpop.f32.mrf.mxu0 }
 0x124   :  { %v213_v21 = vadd.f32 %v687_v17, %v212_v19 }
 0x125   :  { %v778_v22 = vpop.f32.mrf.mxu0 }
 0x126   :  { %v216_v23 = vpack.c.bf16 %v213_v21, %v210_v20 }
 0x128   :  { %780 = vmatpush3.bf16.msra.mxu0 %v216_v23 }
 0x129   :  { %805 = vmatprep.subr.bf16.mxu0 %v1023_v0 }
 0x12b   :  { %782 = vmatmul.mubr.msk.bf16.vlgmr.msra.gmra.mxu0 %vm222_vm1, %v1118_v24 }
 0x12c   :  { %807 = vmatprep.mubr.msk.bf16.mxu0 %vm1024_vm0, %v1023_v0 }
 0x1eb   :  { %v260_v27 = vpop.f32.mrf.mxu0 }
 0x1ec   :  { %v267_v30 = vmax.f32 %v260_v27, 0.0 }
 0x1ed   :  { %v783_v28 = vpop.f32.mrf.mxu0 }
 0x1ef   :  { %v263_v29 = vpop.f32.mrf.mxu0 }
 0x1f0   :  { %v268_v31 = vmax.f32 %v263_v29, 0.0 }
 0x1f1   :  { %v784_v32 = vpop.f32.mrf.mxu0 }
 0x1f2   :  { %v269_v33 = vpack.c.bf16 %v268_v31, %v267_v30 }
 0x1f4   :  { %802 = vmatmul.mubr.bf16.vlgmr.msra.gmra.mxu1 %v269_v33 }
 0x1f5   :  { %827 = vmatprep.mubr.msk.bf16.mxu1 %vm1024_vm0, %v1023_v0  ;;  %812 = vmatpush3.bf16.msra.mxu1 %v872_v34 }
 0x1f6   :  { %813 = vmatprep.subr.bf16.mxu1 %v1023_v0 }
 0x1f9   :  { %814 = vmatpush3.bf16.msra.mxu1 %v873_v35 }
 0x1fa   :  { %815 = vmatprep.subr.bf16.mxu1 %v1023_v0 }
 0x1fd   :  { %816 = vmatpush3.bf16.msra.mxu1 %v874_v36 }
 0x1fe   :  { %817 = vmatprep.subr.bf16.mxu1 %v1023_v0 }
 0x201   :  { %818 = vmatpush3.bf16.msra.mxu1 %v875_v37 }
 0x202   :  { %819 = vmatprep.subr.bf16.mxu1 %v1023_v0 }
 0x205   :  { %820 = vmatpush3.bf16.msra.mxu1 %v876_v38 }
 0x206   :  { %821 = vmatprep.subr.bf16.mxu1 %v1023_v0 }
 0x209   :  { %822 = vmatpush3.bf16.msra.mxu1 %v877_v39 }
 0x20a   :  { %823 = vmatprep.subr.bf16.mxu1 %v1023_v0 }
 0x20d   :  { %824 = vmatpush3.bf16.msra.mxu1 %v878_v48 }
 0x20e   :  { %825 = vmatprep.subr.bf16.mxu1 %v1023_v0 }
 0x211   :  { %826 = vmatpush3.bf16.msra.mxu1 %v879_v49 }
 0x2b4   :  { %v377_v40 = vpop.f32.mrf.mxu1 }
 0x2b5   :  { %v378_v44 = vadd.f32 %v700_v41, %v377_v40 }
 0x2b6   :  { %v803_v42 = vpop.f32.mrf.mxu1 }
 0x2b8   :  { %v380_v43 = vpop.f32.mrf.mxu1 }
 0x2b9   :  { %v381_v45 = vadd.f32 %v700_v41, %v380_v43 }
 0x2ba   :  { %v804_v46 = vpop.f32.mrf.mxu1 }
 0x2bb   :  { %v384_v47 = vpack.c.bf16 %v381_v45, %v378_v44 }
 0x2bd   :  { %806 = vmatpush3.bf16.msra.mxu0 %v384_v47 }
 0x2be   :  { %831 = vmatprep.subr.bf16.mxu0 %v1023_v0 }
 0x2c0   :  { %808 = vmatmul.mubr.msk.bf16.vlgmr.msra.gmra.mxu0 %vm222_vm1, %v1118_v24 }
 0x2c1   :  { %833 = vmatprep.mubr.msk.bf16.mxu0 %vm1024_vm0, %v1023_v0 }
 0x380   :  { %v419_v50 = vpop.f32.mrf.mxu0 }
 0x381   :  { %v426_v53 = vmax.f32 %v419_v50, 0.0 }
 0x382   :  { %v809_v51 = vpop.f32.mrf.mxu0 }
 0x384   :  { %v422_v52 = vpop.f32.mrf.mxu0 }
 0x385   :  { %v427_v54 = vmax.f32 %v422_v52, 0.0 }
 0x386   :  { %v810_v55 = vpop.f32.mrf.mxu0 }
 0x387   :  { %v428_v56 = vpack.c.bf16 %v427_v54, %v426_v53 }
 0x389   :  { %828 = vmatmul.mubr.bf16.vlgmr.msra.gmra.mxu1 %v428_v56 }
 0x449   :  { %v534_v57 = vpop.f32.mrf.mxu1 }
 0x44a   :  { %v535_v61 = vadd.f32 %v710_v58, %v534_v57 }
 0x44b   :  { %v829_v59 = vpop.f32.mrf.mxu1 }
 0x44d   :  { %v537_v60 = vpop.f32.mrf.mxu1 }
 0x44e   :  { %v538_v62 = vadd.f32 %v710_v58, %v537_v60 }
 0x44f   :  { %v830_v63 = vpop.f32.mrf.mxu1 }
 0x450   :  { %v541_v1 = vpack.c.bf16 %v538_v62, %v535_v61 }
 0x452   :  { %832 = vmatpush3.bf16.msra.mxu0 %v541_v1 }
 0x453   :  { %837 = vmatprep.subr.mxu0 %v1023_v0 }
 0x455   :  { %834 = vmatmul.mubr.msk.bf16.vlgmr.msra.gmra.mxu0 %vm222_vm1, %v1118_v24 }
 0x456   :  { %841 = vmatprep.mubr.msk.f32.mxu0 %vm1024_vm0, %v1023_v0 }
 0x515   :  { %v576_v2 = vpop.f32.mrf.mxu0 }
 0x516   :  { %v720_v3 = vmul.f32 -1.442695, %v576_v2 }
 0x517   :  { %v835_v4 = vpop.f32.mrf.mxu0 }
 0x518   :  { %880 = vpow2.f32 %v720_v3 }
 0x519   :  { %v579_v5 = vpop.f32.mrf.mxu0 }
 0x51a   :  { %v721_v6 = vmul.f32 -1.442695, %v579_v5 }
 0x51b   :  { %v836_v7 = vpop.f32.mrf.mxu0 }
 0x51c   :  { %882 = vpow2.f32 %v721_v6 }
 0x525   :  { %v881_v8 = vpop.eup %880 }
 0x526   :  { %v589_v10 = vadd.f32 1.0, %v881_v8 }
 0x529   :  { %v883_v9 = vpop.eup %882 }
 0x52a   :  { %v590_v11 = vadd.f32 1.0, %v883_v9 }
 0x52c   :  { %884 = vrcp.f32 %v590_v11 }
 0x52d   :  { %886 = vrcp.f32 %v589_v10 }
 0x539   :  { %v885_v12 = vpop.eup %884 }
 0x53a   :  { %838 = vmatpush3.msra.mxu0 %v885_v12  ;;  %v887_v14 = vpop.eup %886 }
 0x53b   :  { %839 = vmatprep.subr.mxu0 %v1023_v0 }
 0x53c   :  { %840 = vmatpush3.msra.mxu0 %v887_v14 }
 0x53d   :  { %842 = vmatmul.mubr.msk.f32.vlgmr.msra.gmra.mxu0 %vm222_vm1, %v595_v13 }
 0x5fd   :  { %v665_v15 = vpop.f32.mrf.mxu0 }
 0x5fe   :  { %669 = vst [vmem:[#allocation11] sm:$0xff] %v665_v15 }
 0x5ff   :  { %v843_v16 = vpop.f32.mrf.mxu0 }
 0x600   :  { %999 = shalt.err (!%p996_p1)
}
 0x601   :  { %679 = dma.vmem_to_hbm [thread:$0]  %s677_s30, 128, %s1164_s7, [#allocation4]  }
 0x602   :  { %1014 = dma.done.wait [#allocation4], 128  }
 0x603   :  { %1015 = vsyncadd [#allocation4], 4294967168 }
 0x604   :  { %683 = vsyncpa [#allocation3], 1 }
 0x605   :  { %684 = vsyncpa [#allocation6], 1 }
 0x606   :  { %685 = vsyncpa [#allocation9], 1 }
 0x607   :  { %686 = vsyncpa [#allocation4], 1 }

</bundles_post_ra>
